<compile_context>
chip_gen: v6e
topology: v6e:2x2x1
jax: 0.10.0
libtpu: 0.0.40
codegen_flags: <defaults>
</compile_context>

<pallas_src>
import math

import jax
import jax.numpy as jnp
from jax.experimental import pallas as pl
from jax.experimental.pallas import tpu as pltpu


def _normalize_kernel(x_ref, mean_ref, inv_std_ref, out_ref):
    # Cast fused into the kernel (input may be bf16/f16/f32); mean / 1/std are
    # (1, W) f32 rows broadcast over the tile rows.
    x = x_ref[...].astype(jnp.float32)
    out_ref[...] = (x - mean_ref[...]) * inv_std_ref[...]


def _pick_tile_rows(m_rows, lane_width, target_bytes=4 << 20,
                    split_min_bytes=256 << 10):
    """Row-tile so each VMEM buffer is ~4 MiB (v6e/v7x sweet spot).

    in+out double-buffered at 4 MiB tiles = 16 MiB of scoped VMEM, which fits
    every generation given vmem_limit_bytes=48 MiB.  If the whole slab fits a
    single tile but is still large, split it in two sublane-aligned tiles so a
    2-TC chip (v7x) can shard the "parallel" grid axis.
    """
    row_bytes = lane_width * 4                       # f32 output is the widest
    target = max(8, (target_bytes // row_bytes) // 8 * 8)
    if m_rows <= target:
        if m_rows * row_bytes >= split_min_bytes and m_rows > 8:
            half = -(-m_rows // 2)                   # ceil(m_rows / 2)
            half = -(-half // 8) * 8                 # round up to multiple of 8
            if half < m_rows:
                return half                          # grid of 2 (edge block ok)
        return m_rows                                # single full block (legal)
    return target


def _choose_fold_width(nd, total):
    """Lane-dense fold width W: multiple of 128, nd | W, W | total; else None."""
    if nd % 128 == 0:
        return nd                                    # already lane-aligned
    g = math.gcd(nd, 128)
    w = nd * (128 // g)                              # lcm(nd, 128)
    if w <= 1024 and total % w == 0:
        return w
    return None


def _normalize_2d(x2d, mean_row, inv_std_row):
    """Tiled, pipelined (x - mean) * inv_std over an [M, W] slab -> f32."""
    m_rows, w = x2d.shape
    tile_m = _pick_tile_rows(m_rows, w)
    grid_m = pl.cdiv(m_rows, tile_m)

    return pl.pallas_call(
        _normalize_kernel,
        out_shape=jax.ShapeDtypeStruct((m_rows, w), jnp.float32),
        grid_spec=pltpu.PrefetchScalarGridSpec(
            num_scalar_prefetch=0,
            grid=(grid_m,),
            in_specs=[
                pl.BlockSpec((tile_m, w), lambda i: (i, 0)),   # streamed tile
                pl.BlockSpec((1, w), lambda i: (0, 0)),        # resident mean
                pl.BlockSpec((1, w), lambda i: (0, 0)),        # resident 1/std
            ],
            out_specs=pl.BlockSpec((tile_m, w), lambda i: (i, 0)),
        ),
        compiler_params=pltpu.CompilerParams(
            dimension_semantics=("parallel",),
            vmem_limit_bytes=48 << 20,
        ),
    )(x2d, mean_row, inv_std_row)


def input_normalization(data, metadata,
                        mean_dynamic, std_dynamic,
                        mean_metadata, std_metadata):
    """JAX/Pallas equivalent of InputNormalization.forward.

    data:     [Nb, Ns, Nd] (any float dtype); metadata: [Nb, Nm]
    mean/std: per-feature vectors [Nd] / [Nm]
    returns:  (x_norm [Nb,Ns,Nd], metadata_norm [Nb,Nm]) in float32
    """
    nb, ns, nd = data.shape
    total = nb * ns * nd

    mean_d = mean_dynamic.astype(jnp.float32)
    inv_std_d = 1.0 / std_dynamic.astype(jnp.float32)   # tiny, exact f32

    w = _choose_fold_width(nd, total)
    if w is not None:
        # Lane folding: pack consecutive feature vectors into lane-dense rows
        # of width lcm(Nd,128); mean/1/std are tiled to match (they repeat).
        reps = w // nd
        x2d = data.reshape(total // w, w)                # original dtype in
        mean_row = jnp.tile(mean_d, reps).reshape(1, w)
        inv_row = jnp.tile(inv_std_d, reps).reshape(1, w)
    else:
        # Last-resort fallback: width Nd < 128 / not 128-friendly.  Legal only
        # because the block last dim equals the full array dim; stores are
        # masked partial-lane vst, so this path is slow but correct.
        x2d = data.reshape(nb * ns, nd)
        mean_row = mean_d.reshape(1, nd)
        inv_row = inv_std_d.reshape(1, nd)

    x_norm = _normalize_2d(x2d, mean_row, inv_row).reshape(nb, ns, nd)

    # Metadata slab is a few KiB: a dedicated pallas_call costs more in fixed
    # launch overhead than the work itself, so do it in plain jnp (XLA fuses
    # the elementwise for free) with exact division semantics.
    meta_norm = (metadata.astype(jnp.float32)
                 - mean_metadata.astype(jnp.float32)) \
        / std_metadata.astype(jnp.float32)

    return x_norm, meta_norm


if __name__ == "__main__":
    key = jax.random.PRNGKey(0)
    k1, k2, k3, k4, k5, k6 = jax.random.split(key, 6)

    Nb, Ns, Nd, Nm = 2, 8, 16, 32  # batch, seq, dynamic feats, metadata feats

    data = jax.random.normal(k1, (Nb, Ns, Nd), dtype=jnp.float32)
    metadata = jax.random.normal(k2, (Nb, Nm), dtype=jnp.float32)

    mean_dynamic = jax.random.normal(k3, (Nd,), dtype=jnp.float32)
    std_dynamic = jax.random.uniform(k4, (Nd,), dtype=jnp.float32,
                                     minval=0.5, maxval=2.0)
    mean_metadata = jax.random.normal(k5, (Nm,), dtype=jnp.float32)
    std_metadata = jax.random.uniform(k6, (Nm,), dtype=jnp.float32,
                                      minval=0.5, maxval=2.0)

    # --- main f32 path (lane-folded: 128 % 16 == 0) ---
    x_norm, meta_norm = input_normalization(
        data, metadata, mean_dynamic, std_dynamic, mean_metadata, std_metadata)
    jax.block_until_ready((x_norm, meta_norm))

    ref_x = (data - mean_dynamic) / std_dynamic
    ref_m = (metadata - mean_metadata) / std_metadata
    assert x_norm.shape == (Nb, Ns, Nd) and meta_norm.shape == (Nb, Nm)
    assert jnp.allclose(x_norm, ref_x, atol=1e-6, rtol=1e-5)
    assert jnp.allclose(meta_norm, ref_m, atol=1e-6, rtol=1e-5)

    # --- bf16 input: cast fused inside the kernel, f32 output ---
    data_bf16 = data.astype(jnp.bfloat16)
    x_norm_b, _ = input_normalization(
        data_bf16, metadata, mean_dynamic, std_dynamic,
        mean_metadata, std_metadata)
    jax.block_until_ready(x_norm_b)
    ref_xb = (data_bf16.astype(jnp.float32) - mean_dynamic) / std_dynamic
    assert x_norm_b.dtype == jnp.float32
    assert jnp.allclose(x_norm_b, ref_xb, atol=1e-5, rtol=1e-5)

    # --- lcm fold path (Nd=24 -> lane width lcm(24,128)=384) ---
    Nd2 = 24
    data2 = jax.random.normal(k1, (Nb, Ns, Nd2), dtype=jnp.float32)
    mean_d2 = jax.random.normal(k3, (Nd2,), dtype=jnp.float32)
    std_d2 = jax.random.uniform(k4, (Nd2,), dtype=jnp.float32,
                                minval=0.5, maxval=2.0)
    x_norm2, _ = input_normalization(
        data2, metadata, mean_d2, std_d2, mean_metadata, std_metadata)
    jax.block_until_ready(x_norm2)
    ref_x2 = (data2 - mean_d2) / std_d2
    assert jnp.allclose(x_norm2, ref_x2, atol=1e-6, rtol=1e-5)

    print("KERNEL_OK")
</pallas_src>

<mosaic_0001>
module attributes {stable_mosaic.version = 11 : i64} {
  func.func @_normalize_kernel(%arg0: i32, %arg1: memref<2x128xf32, #tpu.memory_space<vmem>>, %arg2: memref<1x128xf32, #tpu.memory_space<vmem>>, %arg3: memref<1x128xf32, #tpu.memory_space<vmem>>, %arg4: memref<2x128xf32, #tpu.memory_space<vmem>>) attributes {dimension_semantics = [#tpu.dimension_semantics<parallel>], iteration_bounds = array<i64: 1>, scalar_prefetch = 0 : i64, scratch_operands = 0 : i64, tpu.core_type = #tpu.core_type<tc>, window_params = [{transform_indices = @transform_0, window_bounds = array<i64: 2, 128>}, {pipeline_mode = #tpu.pipeline_mode<synchronous>, transform_indices = @transform_1, window_bounds = array<i64: 1, 128>}, {pipeline_mode = #tpu.pipeline_mode<synchronous>, transform_indices = @transform_2, window_bounds = array<i64: 1, 128>}, {transform_indices = @transform_3, window_bounds = array<i64: 2, 128>}]} {
    %c0 = arith.constant 0 : index
    %c0_0 = arith.constant 0 : index
    %0 = vector.load %arg1[%c0, %c0_0] : memref<2x128xf32, #tpu.memory_space<vmem>>, vector<2x128xf32>
    %c0_1 = arith.constant 0 : index
    %c0_2 = arith.constant 0 : index
    %1 = vector.load %arg2[%c0_1, %c0_2] : memref<1x128xf32, #tpu.memory_space<vmem>>, vector<1x128xf32>
    %2 = vector.broadcast %1 : vector<1x128xf32> to vector<2x128xf32>
    %3 = arith.subf %0, %2 : vector<2x128xf32>
    %c0_3 = arith.constant 0 : index
    %c0_4 = arith.constant 0 : index
    %4 = vector.load %arg3[%c0_3, %c0_4] : memref<1x128xf32, #tpu.memory_space<vmem>>, vector<1x128xf32>
    %5 = vector.broadcast %4 : vector<1x128xf32> to vector<2x128xf32>
    %6 = arith.mulf %3, %5 : vector<2x128xf32>
    %c0_5 = arith.constant 0 : index
    %c0_6 = arith.constant 0 : index
    %7 = vector.load %arg4[%c0_5, %c0_6] : memref<2x128xf32, #tpu.memory_space<vmem>>, vector<2x128xf32>
    tpu.vector_store %arg4[%c0_5, %c0_6], %6 {strides = array<i32>} : memref<2x128xf32, #tpu.memory_space<vmem>>, vector<2x128xf32>,
    return
  }
  func.func @transform_0(%arg0: i32) -> (i32, i32) {
    %c0_i32 = arith.constant 0 : i32
    %c0_i32_0 = arith.constant 0 : i32
    return %arg0, %c0_i32 : i32, i32
  }
  func.func @transform_1(%arg0: i32) -> (i32, i32) {
    %c0_i32 = arith.constant 0 : i32
    %c0_i32_0 = arith.constant 0 : i32
    %c0_i32_1 = arith.constant 0 : i32
    return %c0_i32, %c0_i32_0 : i32, i32
  }
  func.func @transform_2(%arg0: i32) -> (i32, i32) {
    %c0_i32 = arith.constant 0 : i32
    %c0_i32_0 = arith.constant 0 : i32
    %c0_i32_1 = arith.constant 0 : i32
    return %c0_i32, %c0_i32_0 : i32, i32
  }
  func.func @transform_3(%arg0: i32) -> (i32, i32) {
    %c0_i32 = arith.constant 0 : i32
    %c0_i32_0 = arith.constant 0 : i32
    return %arg0, %c0_i32 : i32, i32
  }
}

</mosaic_0001>

<bundles_post_ra>
// kernel: tpu_custom_call.1
= control target key start
LH: loop header
LB: loop body
LE: loop exit
PB: predicated region body
PF: predicated region fallthrough
CT: control target
= control target key end

     0   :  { %8 = vsyncpa [#allocation3], 0  ;;  %s142_s0 = inlined_call_operand.hbm [shape: f32[2,128], index: 0, kind: input, shape index: {}]   ;;  %s143_s1 = inlined_call_operand.vmem [shape: f32[1,128], index: 1, kind: input, shape index: {}]   ;;  %s144_s2 = inlined_call_operand.vmem [shape: f32[1,128], index: 2, kind: input, shape index: {}]   ;;  %s145_s3 = inlined_call_operand.hbm [shape: f32[2,128], index: 3, kind: output, shape index: {}]  }
   0x1   :  { %9 = vsyncpa [#allocation4], 0  ;;  %s108_s12 = smov [#allocation2]  }
   0x2   :  { %s16_s13 = sshll.u32 %s108_s12, 4  ;;  %s17_s13 = int_to_ptr.vmem [resolvable:$true] %s16_s13 }
   0x3   :  { %s72_s14 = scalar_lea.vmem %s17_s13, 32  ;;  %p77_p1 = scmp.lt.s32.totalorder %s17_s13, %s17_s13 }
   0x4   :  { %p73_p0 = scmp.ne.s32.totalorder %s17_s13, %s72_s14  ;;  %p78_p2 = scmp.lt.s32.totalorder %s72_s14, %s72_s14 }
   0x6   :  { %p79_p3 = por %p78_p2, %p77_p1 }
   0x8   :  { %p80_p4 = pnand %p79_p3, %p73_p0 }
   0xa   :  { %83 = shalt.err (!%p80_p4)
}
   0xb   :  { %19 = dma.hbm_to_vmem [thread:$0]  %s142_s0, 32, %s17_s13, [#allocation3]  }
   0xc   :  { %104 = dma.done.wait [#allocation3], 32  }
   0xd   :  { %105 = vsyncadd [#allocation3], 4294967264  ;;  %s109_s17 = smov [#allocation5]   ;;  %v27_v0 = vld [vmem:[#allocation2] sm:$0x3] }
   0xe   :  { %s51_s18 = sshll.u32 %s109_s17, 4  ;;  %v60_v1 = vld [vmem:[%s143_s1] ss:$0 sm:$0xff]  ;;  %s52_s18 = int_to_ptr.vmem [resolvable:$true] %s51_s18 }
   0xf   :  { %v61_v2 = vld [vmem:[%s144_s2] ss:$0 sm:$0xff]  ;;  %v35_v3 = vsub.f32 %v27_v0, %v60_v1  ;;  %s84_s23 = scalar_lea.vmem %s52_s18, 32  ;;  %p89_p6 = scmp.lt.s32.totalorder %s52_s18, %s52_s18 }
  0x10   :  { %p85_p5 = scmp.ne.s32.totalorder %s52_s18, %s84_s23  ;;  %p90_p7 = scmp.lt.s32.totalorder %s84_s23, %s84_s23 }
  0x11   :  { %v43_v4 = vmul.f32 %v61_v2, %v35_v3 }
  0x12   :  { %p91_p8 = por %p90_p7, %p89_p6 }
  0x13   :  { %44 = vst [vmem:[#allocation5] sm:$0x3] %v43_v4 }
  0x14   :  { %p92_p9 = pnand %p91_p8, %p85_p5 }
  0x16   :  { %95 = shalt.err (!%p92_p9)
}
  0x17   :  { %54 = dma.vmem_to_hbm [thread:$0]  %s52_s18, 32, %s145_s3, [#allocation4]  }
  0x18   :  { %106 = dma.done.wait [#allocation4], 32  }
  0x19   :  { %107 = vsyncadd [#allocation4], 4294967264 }
  0x1a   :  { %58 = vsyncpa [#allocation3], 1 }
  0x1b   :  { %59 = vsyncpa [#allocation4], 1 }

</bundles_post_ra>
